<compile_context>
chip_gen: v6e
topology: v6e:2x2x1
jax: 0.10.0
libtpu: 0.0.40
codegen_flags: <defaults>
</compile_context>

<pallas_src>
import jax
import jax.numpy as jnp
from jax.experimental import pallas as pl
from jax.experimental.pallas import tpu as pltpu

K = 3  # conv kernel size


# ----------------------------------------------------------------------------
# Fused Pallas kernel: conv(3x3,pad=1) + ReLU + GAP + Linear(OC,512) + RR head
# ----------------------------------------------------------------------------
def _make_fused_kernel(H, W, C, OC):
    NCOL = W * OC

    def kernel(x_ref, wb_ref, cb_ref, pool_ref,
               w1_ref, b1_ref, s1_ref, t1_ref,
               w2_ref, b2_ref, s2_ref, t2_ref,
               w3_ref, b3_ref, o_ref):
        # ---- conv: in-kernel im2col as 3 row-shifted banded matmuls (bf16 MXU,
        #      f32 accumulate).  x_ref: [HP, (W+2)*C] bf16, wb_ref: [3, (W+2)*C, W*OC]
        acc = jnp.zeros((H, NCOL), jnp.float32)
        for dy in range(K):
            acc = acc + jnp.dot(x_ref[dy:dy + H, :], wb_ref[dy],
                                preferred_element_type=jnp.float32)
        conv = jnp.maximum(acc + cb_ref[...], 0.0)              # [H, W*OC]  f32

        # ---- global average pool: sum over h (sublanes), then fold the w-groups
        #      inside the lane axis with a [W*OC, OC] pooling matrix (includes 1/HW).
        row = jnp.sum(conv, axis=0, keepdims=True)              # [1, W*OC]
        pooled = jnp.dot(row, pool_ref[...],
                         preferred_element_type=jnp.float32)    # [1, OC]

        # ---- IE tail Linear(OC,512), then RR head with eval-mode BN folded.
        f = jnp.dot(pooled.astype(jnp.bfloat16), w1_ref[...],
                    preferred_element_type=jnp.float32) + b1_ref[...]
        f = f * s1_ref[...] + t1_ref[...]                       # BatchNorm1d(512), Dropout=id
        h = jnp.dot(f.astype(jnp.bfloat16), w2_ref[...],
                    preferred_element_type=jnp.float32) + b2_ref[...]
        h = jnp.maximum(h * s2_ref[...] + t2_ref[...], 0.0)     # BatchNorm1d(32)+ReLU, Dropout=id
        out = jnp.dot(h.astype(jnp.bfloat16), w3_ref[...],
                      preferred_element_type=jnp.float32) + b3_ref[...]
        o_ref[...] = out.reshape(1, 1, 1)

    return kernel


# ----------------------------------------------------------------------------
# Parameter init (deterministic, fresh-module style)
# ----------------------------------------------------------------------------
def init_params(key, c_in=4, conv_oc=16):
    ks = jax.random.split(key, 8)
    p = {}
    # IE: Conv2d(c_in, conv_oc, 3, padding=1)
    p["conv_w"] = 0.1 * jax.random.normal(ks[0], (conv_oc, c_in, 3, 3), jnp.float32)
    p["conv_b"] = 0.1 * jax.random.normal(ks[1], (conv_oc,), jnp.float32)
    # IE tail: Linear(conv_oc, 512)
    p["fc0_w"] = 0.1 * jax.random.normal(ks[2], (512, conv_oc), jnp.float32)
    p["fc0_b"] = 0.1 * jax.random.normal(ks[3], (512,), jnp.float32)
    # RR: BatchNorm1d(512) — fresh init
    p["bn1_gamma"] = jnp.ones((512,), jnp.float32)
    p["bn1_beta"] = jnp.zeros((512,), jnp.float32)
    p["bn1_mean"] = jnp.zeros((512,), jnp.float32)
    p["bn1_var"] = jnp.ones((512,), jnp.float32)
    # RR: Linear(512, 32)
    p["fc1_w"] = 0.05 * jax.random.normal(ks[4], (32, 512), jnp.float32)
    p["fc1_b"] = 0.05 * jax.random.normal(ks[5], (32,), jnp.float32)
    # RR: BatchNorm1d(32)
    p["bn2_gamma"] = jnp.ones((32,), jnp.float32)
    p["bn2_beta"] = jnp.zeros((32,), jnp.float32)
    p["bn2_mean"] = jnp.zeros((32,), jnp.float32)
    p["bn2_var"] = jnp.ones((32,), jnp.float32)
    # RR: Linear(32, 1)
    p["fc2_w"] = 0.1 * jax.random.normal(ks[6], (1, 32), jnp.float32)
    p["fc2_b"] = 0.1 * jax.random.normal(ks[7], (1,), jnp.float32)
    return p


def _bn_affine(gamma, beta, mean, var, eps=1e-5):
    scale = gamma / jnp.sqrt(var + eps)
    shift = beta - mean * scale
    return scale[None, :], shift[None, :]


# ----------------------------------------------------------------------------
# Forward: small weight/activation prep in XLA, one fused pallas_call.
# ----------------------------------------------------------------------------
@jax.jit
def mffkan_forward(params, X, f_p):
    del f_p  # unused, same as the PyTorch forward
    B, C, H, W = X.shape
    OC = params["conv_w"].shape[0]
    KROW = (W + 2) * C                 # lane width of the padded activation slab
    NCOL = W * OC                      # lane width of the conv output
    HP = ((H + 2 + 15) // 16) * 16     # rows per image, bf16 sublane-tile aligned

    # ---- activation prep (glue): NCHW -> padded NHWC -> [B*HP, (W+2)*C] bf16 ----
    xp = jnp.pad(X, ((0, 0), (0, 0), (1, 1), (1, 1)))         # [B, C, H+2, W+2]
    xh = jnp.transpose(xp, (0, 2, 3, 1))                      # [B, H+2, W+2, C]
    xh = jnp.pad(xh, ((0, 0), (0, HP - (H + 2)), (0, 0), (0, 0)))
    x2d = xh.reshape(B * HP, KROW).astype(jnp.bfloat16)

    # ---- lane-banded conv weights: wb[dy][(w+dx)*C + c, w*OC + oc] = conv_w[oc,c,dy,dx]
    cw = params["conv_w"]                                     # [OC, C, 3, 3]
    wb = jnp.stack([
        sum(jnp.kron(jnp.eye(W + 2, W, k=-dx, dtype=jnp.float32),
                     cw[:, :, dy, dx].T)                      # [C, OC]
            for dx in range(K))
        for dy in range(K)
    ]).astype(jnp.bfloat16)                                   # [3, KROW, NCOL]
    cb = jnp.tile(params["conv_b"], W)[None, :]               # [1, NCOL]  (bias per (w,oc) lane)
    pool = jnp.tile(jnp.eye(OC, dtype=jnp.float32), (W, 1)) / float(H * W)  # [NCOL, OC]

    # ---- fold BN running stats into eval-mode scale/shift ----
    s1, t1 = _bn_affine(params["bn1_gamma"], params["bn1_beta"],
                        params["bn1_mean"], params["bn1_var"])
    s2, t2 = _bn_affine(params["bn2_gamma"], params["bn2_beta"],
                        params["bn2_mean"], params["bn2_var"])

    w1 = params["fc0_w"].T.astype(jnp.bfloat16)               # [OC, 512]
    b1 = params["fc0_b"][None, :]
    w2 = params["fc1_w"].T.astype(jnp.bfloat16)               # [512, 32]
    b2 = params["fc1_b"][None, :]
    w3 = params["fc2_w"].T.astype(jnp.bfloat16)               # [32, 1]
    b3 = params["fc2_b"][None, :]

    args = (x2d, wb, cb, pool, w1, b1, s1, t1, w2, b2, s2, t2, w3, b3)

    flops = int(B * (2 * K * H * KROW * NCOL + 2 * NCOL * OC
                     + 2 * OC * 512 + 2 * 512 * 32 + 2 * 32))
    bytes_accessed = int(sum(a.size * a.dtype.itemsize for a in args) + B * 4)

    def _const2(b):
        return (0, 0)

    in_specs = [
        pl.BlockSpec((HP, KROW), lambda b: (b, 0)),           # per-image activation slab
        pl.BlockSpec((K, KROW, NCOL), lambda b: (0, 0, 0)),   # banded conv weights
        pl.BlockSpec((1, NCOL), _const2),                     # conv bias (tiled over w)
        pl.BlockSpec((NCOL, OC), _const2),                    # pooling matrix (w-fold + 1/HW)
        pl.BlockSpec((OC, 512), _const2),                     # Linear(OC,512)
        pl.BlockSpec((1, 512), _const2),                      # b1
        pl.BlockSpec((1, 512), _const2),                      # BN1 scale
        pl.BlockSpec((1, 512), _const2),                      # BN1 shift
        pl.BlockSpec((512, 32), _const2),                     # Linear(512,32)
        pl.BlockSpec((1, 32), _const2),                       # b2
        pl.BlockSpec((1, 32), _const2),                       # BN2 scale
        pl.BlockSpec((1, 32), _const2),                       # BN2 shift
        pl.BlockSpec((32, 1), _const2),                       # Linear(32,1)
        pl.BlockSpec((1, 1), _const2),                        # b3
    ]

    out = pl.pallas_call(
        _make_fused_kernel(H, W, C, OC),
        grid=(B,),
        in_specs=in_specs,
        out_specs=pl.BlockSpec((1, 1, 1), lambda b: (b, 0, 0)),
        out_shape=jax.ShapeDtypeStruct((B, 1, 1), jnp.float32),
        compiler_params=pltpu.CompilerParams(
            dimension_semantics=("parallel",)),
        cost_estimate=pl.CostEstimate(flops=flops, transcendentals=0,
                                      bytes_accessed=bytes_accessed),
    )(*args)
    return out.reshape(B, 1)


# ----------------------------------------------------------------------------
# Pure-JAX reference (f32) for a loose numerical check.
# ----------------------------------------------------------------------------
def reference_forward(params, X):
    conv = jax.lax.conv_general_dilated(
        X, params["conv_w"], window_strides=(1, 1),
        padding=((1, 1), (1, 1)),
        dimension_numbers=("NCHW", "OIHW", "NCHW"))
    conv = jnp.maximum(conv + params["conv_b"][None, :, None, None], 0.0)
    pooled = conv.mean(axis=(2, 3))
    s1, t1 = _bn_affine(params["bn1_gamma"], params["bn1_beta"],
                        params["bn1_mean"], params["bn1_var"])
    s2, t2 = _bn_affine(params["bn2_gamma"], params["bn2_beta"],
                        params["bn2_mean"], params["bn2_var"])
    f = pooled @ params["fc0_w"].T + params["fc0_b"]
    f = f * s1 + t1
    h = f @ params["fc1_w"].T + params["fc1_b"]
    h = jnp.maximum(h * s2 + t2, 0.0)
    return h @ params["fc2_w"].T + params["fc2_b"]


# ----------------------------------------------------------------------------
if __name__ == "__main__":
    key = jax.random.PRNGKey(0)
    k_param, k_x, k_fp = jax.random.split(key, 3)

    B, C, H, W = 2, 4, 16, 16
    X = jax.random.normal(k_x, (B, C, H, W), jnp.float32)
    f_p = jax.random.normal(k_fp, (B, 8), jnp.float32)   # unused by forward

    params = init_params(k_param, c_in=C, conv_oc=16)

    out = jax.block_until_ready(mffkan_forward(params, X, f_p))
    assert out.shape == (B, 1), out.shape
    assert bool(jnp.all(jnp.isfinite(out)))

    ref = reference_forward(params, X)
    max_err = float(jnp.max(jnp.abs(out - ref)))
    assert max_err < 5e-2, f"max abs err {max_err}"

    print("KERNEL_OK")
</pallas_src>

<mosaic_0001>
module attributes {stable_mosaic.version = 11 : i64} {
  func.func @kernel(%arg0: i32, %arg1: memref<32x72xbf16, #tpu.memory_space<vmem>>, %arg2: memref<3x72x256xbf16, #tpu.memory_space<vmem>>, %arg3: memref<1x256xf32, #tpu.memory_space<vmem>>, %arg4: memref<256x16xf32, #tpu.memory_space<vmem>>, %arg5: memref<16x512xbf16, #tpu.memory_space<vmem>>, %arg6: memref<1x512xf32, #tpu.memory_space<vmem>>, %arg7: memref<1x512xf32, #tpu.memory_space<vmem>>, %arg8: memref<1x512xf32, #tpu.memory_space<vmem>>, %arg9: memref<512x32xbf16, #tpu.memory_space<vmem>>, %arg10: memref<1x32xf32, #tpu.memory_space<vmem>>, %arg11: memref<1x32xf32, #tpu.memory_space<vmem>>, %arg12: memref<1x32xf32, #tpu.memory_space<vmem>>, %arg13: memref<32x1xbf16, #tpu.memory_space<vmem>>, %arg14: memref<1x1xf32, #tpu.memory_space<vmem>>, %arg15: memref<1x1x1xf32, #tpu.memory_space<vmem>>) attributes {dimension_semantics = [#tpu.dimension_semantics<parallel>], iteration_bounds = array<i64: 2>, scalar_prefetch = 0 : i64, scratch_operands = 0 : i64, tpu.core_type = #tpu.core_type<tc>, window_params = [{transform_indices = @transform_0, window_bounds = array<i64: 32, 72>}, {pipeline_mode = #tpu.pipeline_mode<synchronous>, transform_indices = @transform_1, window_bounds = array<i64: 3, 72, 256>}, {pipeline_mode = #tpu.pipeline_mode<synchronous>, transform_indices = @transform_2, window_bounds = array<i64: 1, 256>}, {pipeline_mode = #tpu.pipeline_mode<synchronous>, transform_indices = @transform_3, window_bounds = array<i64: 256, 16>}, {pipeline_mode = #tpu.pipeline_mode<synchronous>, transform_indices = @transform_4, window_bounds = array<i64: 16, 512>}, {pipeline_mode = #tpu.pipeline_mode<synchronous>, transform_indices = @transform_5, window_bounds = array<i64: 1, 512>}, {pipeline_mode = #tpu.pipeline_mode<synchronous>, transform_indices = @transform_6, window_bounds = array<i64: 1, 512>}, {pipeline_mode = #tpu.pipeline_mode<synchronous>, transform_indices = @transform_7, window_bounds = array<i64: 1, 512>}, {pipeline_mode = #tpu.pipeline_mode<synchronous>, transform_indices = @transform_8, window_bounds = array<i64: 512, 32>}, {pipeline_mode = #tpu.pipeline_mode<synchronous>, transform_indices = @transform_9, window_bounds = array<i64: 1, 32>}, {pipeline_mode = #tpu.pipeline_mode<synchronous>, transform_indices = @transform_10, window_bounds = array<i64: 1, 32>}, {pipeline_mode = #tpu.pipeline_mode<synchronous>, transform_indices = @transform_11, window_bounds = array<i64: 1, 32>}, {pipeline_mode = #tpu.pipeline_mode<synchronous>, transform_indices = @transform_12, window_bounds = array<i64: 32, 1>}, {pipeline_mode = #tpu.pipeline_mode<synchronous>, transform_indices = @transform_13, window_bounds = array<i64: 1, 1>}, {transform_indices = @transform_14, window_bounds = array<i64: 1, 1, 1>}]} {
    %cst = arith.constant 0.000000e+00 : f32
    %0 = vector.broadcast %cst : f32 to vector<16x256xf32>
    %c0 = arith.constant 0 : index
    %c0_0 = arith.constant 0 : index
    %1 = vector.load %arg1[%c0, %c0_0] : memref<32x72xbf16, #tpu.memory_space<vmem>>, vector<16x72xbf16>
    %c0_1 = arith.constant 0 : index
    %c0_2 = arith.constant 0 : index
    %c0_3 = arith.constant 0 : index
    %2 = vector.load %arg2[%c0_1, %c0_2, %c0_3] : memref<3x72x256xbf16, #tpu.memory_space<vmem>>, vector<1x72x256xbf16>
    %3 = vector.shape_cast %2 : vector<1x72x256xbf16> to vector<72x256xbf16>
    %cst_4 = arith.constant dense<0.000000e+00> : vector<16x256xf32>
    %4 = tpu.matmul %1, %3, %cst_4 {dimension_numbers = #tpu.dot_dimension_numbers<[1], [0], [0], [1], [0, 0, 1, 1], [], []>} : vector<16x72xbf16>, vector<72x256xbf16>, vector<16x256xf32> -> vector<16x256xf32>
    %5 = arith.addf %0, %4 : vector<16x256xf32>
    %c1 = arith.constant 1 : index
    %c0_5 = arith.constant 0 : index
    %6 = vector.load %arg1[%c1, %c0_5] : memref<32x72xbf16, #tpu.memory_space<vmem>>, vector<16x72xbf16>
    %c1_6 = arith.constant 1 : index
    %c0_7 = arith.constant 0 : index
    %c0_8 = arith.constant 0 : index
    %7 = vector.load %arg2[%c1_6, %c0_7, %c0_8] : memref<3x72x256xbf16, #tpu.memory_space<vmem>>, vector<1x72x256xbf16>
    %8 = vector.shape_cast %7 : vector<1x72x256xbf16> to vector<72x256xbf16>
    %cst_9 = arith.constant dense<0.000000e+00> : vector<16x256xf32>
    %9 = tpu.matmul %6, %8, %cst_9 {dimension_numbers = #tpu.dot_dimension_numbers<[1], [0], [0], [1], [0, 0, 1, 1], [], []>} : vector<16x72xbf16>, vector<72x256xbf16>, vector<16x256xf32> -> vector<16x256xf32>
    %10 = arith.addf %5, %9 : vector<16x256xf32>
    %c2 = arith.constant 2 : index
    %c0_10 = arith.constant 0 : index
    %11 = vector.load %arg1[%c2, %c0_10] : memref<32x72xbf16, #tpu.memory_space<vmem>>, vector<16x72xbf16>
    %c2_11 = arith.constant 2 : index
    %c0_12 = arith.constant 0 : index
    %c0_13 = arith.constant 0 : index
    %12 = vector.load %arg2[%c2_11, %c0_12, %c0_13] : memref<3x72x256xbf16, #tpu.memory_space<vmem>>, vector<1x72x256xbf16>
    %13 = vector.shape_cast %12 : vector<1x72x256xbf16> to vector<72x256xbf16>
    %cst_14 = arith.constant dense<0.000000e+00> : vector<16x256xf32>
    %14 = tpu.matmul %11, %13, %cst_14 {dimension_numbers = #tpu.dot_dimension_numbers<[1], [0], [0], [1], [0, 0, 1, 1], [], []>} : vector<16x72xbf16>, vector<72x256xbf16>, vector<16x256xf32> -> vector<16x256xf32>
    %15 = arith.addf %10, %14 : vector<16x256xf32>
    %c0_15 = arith.constant 0 : index
    %c0_16 = arith.constant 0 : index
    %16 = vector.load %arg3[%c0_15, %c0_16] : memref<1x256xf32, #tpu.memory_space<vmem>>, vector<1x256xf32>
    %17 = vector.broadcast %16 : vector<1x256xf32> to vector<16x256xf32>
    %18 = arith.addf %15, %17 : vector<16x256xf32>
    %cst_17 = arith.constant 0.000000e+00 : f32
    %19 = vector.broadcast %cst_17 : f32 to vector<16x256xf32>
    %20 = arith.maximumf %18, %19 : vector<16x256xf32>
    %cst_18 = arith.constant dense<0.000000e+00> : vector<256xf32>
    %21 = vector.multi_reduction <add>, %20, %cst_18 [0] : vector<16x256xf32> to vector<256xf32>
    %22 = vector.shape_cast %21 : vector<256xf32> to vector<1x256xf32>
    %c0_19 = arith.constant 0 : index
    %c0_20 = arith.constant 0 : index
    %23 = vector.load %arg4[%c0_19, %c0_20] : memref<256x16xf32, #tpu.memory_space<vmem>>, vector<256x16xf32>
    %cst_21 = arith.constant dense<0.000000e+00> : vector<1x16xf32>
    %24 = tpu.matmul %22, %23, %cst_21 {dimension_numbers = #tpu.dot_dimension_numbers<[1], [0], [0], [1], [0, 0, 1, 1], [], []>} : vector<1x256xf32>, vector<256x16xf32>, vector<1x16xf32> -> vector<1x16xf32>
    %25 = arith.truncf %24 : vector<1x16xf32> to vector<1x16xbf16>
    %c0_22 = arith.constant 0 : index
    %c0_23 = arith.constant 0 : index
    %26 = vector.load %arg5[%c0_22, %c0_23] : memref<16x512xbf16, #tpu.memory_space<vmem>>, vector<16x512xbf16>
    %cst_24 = arith.constant dense<0.000000e+00> : vector<1x512xf32>
    %27 = tpu.matmul %25, %26, %cst_24 {dimension_numbers = #tpu.dot_dimension_numbers<[1], [0], [0], [1], [0, 0, 1, 1], [], []>} : vector<1x16xbf16>, vector<16x512xbf16>, vector<1x512xf32> -> vector<1x512xf32>
    %c0_25 = arith.constant 0 : index
    %c0_26 = arith.constant 0 : index
    %28 = vector.load %arg6[%c0_25, %c0_26] : memref<1x512xf32, #tpu.memory_space<vmem>>, vector<1x512xf32>
    %29 = arith.addf %27, %28 : vector<1x512xf32>
    %c0_27 = arith.constant 0 : index
    %c0_28 = arith.constant 0 : index
    %30 = vector.load %arg7[%c0_27, %c0_28] : memref<1x512xf32, #tpu.memory_space<vmem>>, vector<1x512xf32>
    %31 = arith.mulf %29, %30 : vector<1x512xf32>
    %c0_29 = arith.constant 0 : index
    %c0_30 = arith.constant 0 : index
    %32 = vector.load %arg8[%c0_29, %c0_30] : memref<1x512xf32, #tpu.memory_space<vmem>>, vector<1x512xf32>
    %33 = arith.addf %31, %32 : vector<1x512xf32>
    %34 = arith.truncf %33 : vector<1x512xf32> to vector<1x512xbf16>
    %c0_31 = arith.constant 0 : index
    %c0_32 = arith.constant 0 : index
    %35 = vector.load %arg9[%c0_31, %c0_32] : memref<512x32xbf16, #tpu.memory_space<vmem>>, vector<512x32xbf16>
    %cst_33 = arith.constant dense<0.000000e+00> : vector<1x32xf32>
    %36 = tpu.matmul %34, %35, %cst_33 {dimension_numbers = #tpu.dot_dimension_numbers<[1], [0], [0], [1], [0, 0, 1, 1], [], []>} : vector<1x512xbf16>, vector<512x32xbf16>, vector<1x32xf32> -> vector<1x32xf32>
    %c0_34 = arith.constant 0 : index
    %c0_35 = arith.constant 0 : index
    %37 = vector.load %arg10[%c0_34, %c0_35] : memref<1x32xf32, #tpu.memory_space<vmem>>, vector<1x32xf32>
    %38 = arith.addf %36, %37 : vector<1x32xf32>
    %c0_36 = arith.constant 0 : index
    %c0_37 = arith.constant 0 : index
    %39 = vector.load %arg11[%c0_36, %c0_37] : memref<1x32xf32, #tpu.memory_space<vmem>>, vector<1x32xf32>
    %40 = arith.mulf %38, %39 : vector<1x32xf32>
    %c0_38 = arith.constant 0 : index
    %c0_39 = arith.constant 0 : index
    %41 = vector.load %arg12[%c0_38, %c0_39] : memref<1x32xf32, #tpu.memory_space<vmem>>, vector<1x32xf32>
    %42 = arith.addf %40, %41 : vector<1x32xf32>
    %cst_40 = arith.constant 0.000000e+00 : f32
    %43 = vector.broadcast %cst_40 : f32 to vector<1x32xf32>
    %44 = arith.maximumf %42, %43 : vector<1x32xf32>
    %45 = arith.truncf %44 : vector<1x32xf32> to vector<1x32xbf16>
    %c0_41 = arith.constant 0 : index
    %c0_42 = arith.constant 0 : index
    %46 = vector.load %arg13[%c0_41, %c0_42] : memref<32x1xbf16, #tpu.memory_space<vmem>>, vector<32x1xbf16>
    %cst_43 = arith.constant dense<0.000000e+00> : vector<1x1xf32>
    %47 = tpu.matmul %45, %46, %cst_43 {dimension_numbers = #tpu.dot_dimension_numbers<[1], [0], [0], [1], [0, 0, 1, 1], [], []>} : vector<1x32xbf16>, vector<32x1xbf16>, vector<1x1xf32> -> vector<1x1xf32>
    %c0_44 = arith.constant 0 : index
    %c0_45 = arith.constant 0 : index
    %48 = vector.load %arg14[%c0_44, %c0_45] : memref<1x1xf32, #tpu.memory_space<vmem>>, vector<1x1xf32>
    %49 = arith.addf %47, %48 : vector<1x1xf32>
    %50 = vector.shape_cast %49 : vector<1x1xf32> to vector<1x1x1xf32>
    %c0_46 = arith.constant 0 : index
    %c0_47 = arith.constant 0 : index
    %c0_48 = arith.constant 0 : index
    %51 = vector.load %arg15[%c0_46, %c0_47, %c0_48] : memref<1x1x1xf32, #tpu.memory_space<vmem>>, vector<1x1x1xf32>
    tpu.vector_store %arg15[%c0_46, %c0_47, %c0_48], %50 {strides = array<i32>} : memref<1x1x1xf32, #tpu.memory_space<vmem>>, vector<1x1x1xf32>,
    return
  }
  func.func @transform_0(%arg0: i32) -> (i32, i32) {
    %c0_i32 = arith.constant 0 : i32
    %c0_i32_0 = arith.constant 0 : i32
    return %arg0, %c0_i32 : i32, i32
  }
  func.func @transform_1(%arg0: i32) -> (i32, i32, i32) {
    %c0_i32 = arith.constant 0 : i32
    %c0_i32_0 = arith.constant 0 : i32
    %c0_i32_1 = arith.constant 0 : i32
    %c0_i32_2 = arith.constant 0 : i32
    return %c0_i32, %c0_i32_0, %c0_i32_1 : i32, i32, i32
  }
  func.func @transform_2(%arg0: i32) -> (i32, i32) {
    %c0_i32 = arith.constant 0 : i32
    %c0_i32_0 = arith.constant 0 : i32
    %c0_i32_1 = arith.constant 0 : i32
    return %c0_i32, %c0_i32_0 : i32, i32
  }
  func.func @transform_3(%arg0: i32) -> (i32, i32) {
    %c0_i32 = arith.constant 0 : i32
    %c0_i32_0 = arith.constant 0 : i32
    %c0_i32_1 = arith.constant 0 : i32
    return %c0_i32, %c0_i32_0 : i32, i32
  }
  func.func @transform_4(%arg0: i32) -> (i32, i32) {
    %c0_i32 = arith.constant 0 : i32
    %c0_i32_0 = arith.constant 0 : i32
    %c0_i32_1 = arith.constant 0 : i32
    return %c0_i32, %c0_i32_0 : i32, i32
  }
  func.func @transform_5(%arg0: i32) -> (i32, i32) {
    %c0_i32 = arith.constant 0 : i32
    %c0_i32_0 = arith.constant 0 : i32
    %c0_i32_1 = arith.constant 0 : i32
    return %c0_i32, %c0_i32_0 : i32, i32
  }
  func.func @transform_6(%arg0: i32) -> (i32, i32) {
    %c0_i32 = arith.constant 0 : i32
    %c0_i32_0 = arith.constant 0 : i32
    %c0_i32_1 = arith.constant 0 : i32
    return %c0_i32, %c0_i32_0 : i32, i32
  }
  func.func @transform_7(%arg0: i32) -> (i32, i32) {
    %c0_i32 = arith.constant 0 : i32
    %c0_i32_0 = arith.constant 0 : i32
    %c0_i32_1 = arith.constant 0 : i32
    return %c0_i32, %c0_i32_0 : i32, i32
  }
  func.func @transform_8(%arg0: i32) -> (i32, i32) {
    %c0_i32 = arith.constant 0 : i32
    %c0_i32_0 = arith.constant 0 : i32
    %c0_i32_1 = arith.constant 0 : i32
    return %c0_i32, %c0_i32_0 : i32, i32
  }
  func.func @transform_9(%arg0: i32) -> (i32, i32) {
    %c0_i32 = arith.constant 0 : i32
    %c0_i32_0 = arith.constant 0 : i32
    %c0_i32_1 = arith.constant 0 : i32
    return %c0_i32, %c0_i32_0 : i32, i32
  }
  func.func @transform_10(%arg0: i32) -> (i32, i32) {
    %c0_i32 = arith.constant 0 : i32
    %c0_i32_0 = arith.constant 0 : i32
    %c0_i32_1 = arith.constant 0 : i32
    return %c0_i32, %c0_i32_0 : i32, i32
  }
  func.func @transform_11(%arg0: i32) -> (i32, i32) {
    %c0_i32 = arith.constant 0 : i32
    %c0_i32_0 = arith.constant 0 : i32
    %c0_i32_1 = arith.constant 0 : i32
    return %c0_i32, %c0_i32_0 : i32, i32
  }
  func.func @transform_12(%arg0: i32) -> (i32, i32) {
    %c0_i32 = arith.constant 0 : i32
    %c0_i32_0 = arith.constant 0 : i32
    %c0_i32_1 = arith.constant 0 : i32
    return %c0_i32, %c0_i32_0 : i32, i32
  }
  func.func @transform_13(%arg0: i32) -> (i32, i32) {
    %c0_i32 = arith.constant 0 : i32
    %c0_i32_0 = arith.constant 0 : i32
    %c0_i32_1 = arith.constant 0 : i32
    return %c0_i32, %c0_i32_0 : i32, i32
  }
  func.func @transform_14(%arg0: i32) -> (i32, i32, i32) {
    %c0_i32 = arith.constant 0 : i32
    %c0_i32_0 = arith.constant 0 : i32
    %c0_i32_1 = arith.constant 0 : i32
    return %arg0, %c0_i32, %c0_i32_0 : i32, i32, i32
  }
}

</mosaic_0001>

<bundles_post_ra>
// kernel: tile.13
= control target key start
LH: loop header
LB: loop body
LE: loop exit
PB: predicated region body
PF: predicated region fallthrough
CT: control target
= control target key end

     0   :  { %s28_s0 = inlined_call_operand.vmem [shape: f32[16], index: 0, kind: input, shape index: {}]   ;;  %s29_s1 = inlined_call_operand.vmem [shape: f32[16,16], index: 1, kind: output, shape index: {}]  }
   0x1   :  { %v4_v0 = vld [vmem:[%s28_s0] ss:$0 sm:$0xff] }
   0x2   :  { %5 = vst [vmem:[%s29_s1] sm:$0xff] %v4_v0  ;;  %8 = vst [vmem:[%s29_s1 + $0x8] sm:$0xff] %v4_v0 }

// kernel: tile.14
= control target key start
LH: loop header
LB: loop body
LE: loop exit
PB: predicated region body
PF: predicated region fallthrough
CT: control target
= control target key end

     0   :  { %s7_s6 = smov 3  ;;  %s21_s9 = smov 3  ;;  %vm4_vm0 = vcmask 130048   ;;  %vm11_vm1 = vcmask 1048448   ;;  %vm18_vm2 = vcmask 917248   ;;  %vm25_vm3 = vcmask 786048   ;;  %s131_s0 = inlined_call_operand.vmem [shape: f32[16,16], index: 0, kind: input, shape index: {}]   ;;  %s132_s1 = inlined_call_operand.vmem [shape: f32[1,256], index: 1, kind: output, shape index: {}]  }
   0x1   :  { %v69_v0 = vld [vmem:[%s131_s0 + $0x7] ss:$8 sm:%s7_s6]   ;;  %s84_s10 = smov 112   ;;  %v71_v1 = vld [vmem:[%s131_s0 + $0x5] ss:$8 sm:%s21_s9]   ;;  %s14_s13 = smov 3 }
   0x2   :  { %9 = vrot.lane.b32.xlu0 %v69_v0, %s84_s10  ;;  %s85_s14 = smov 80   ;;  %v70_v2 = vld [vmem:[%s131_s0 + $0x6] ss:$8 sm:%s14_s13]   ;;  %s28_s17 = smov 3  ;;  %vm32_vm4 = vcmask 654848   ;;  %vm39_vm5 = vcmask 523648  }
   0x3   :  { %23 = vrot.lane.b32.xlu1 %v71_v1, %s85_s14  ;;  %v72_v3 = vld [vmem:[%s131_s0 + $0x4] ss:$8 sm:%s28_s17]   ;;  %s35_s20 = smov 3  ;;  %s42_s21 = smov 3  ;;  %vm46_vm6 = vcmask 392448   ;;  %vm53_vm7 = vcmask 261248  }
   0x4   :  { %s86_s22 = smov 96   ;;  %s87_s23 = smov 64   ;;  %v73_v4 = vld [vmem:[%s131_s0 + $0x3] ss:$8 sm:%s35_s20]   ;;  %v74_v5 = vld [vmem:[%s131_s0 + $0x2] ss:$8 sm:%s42_s21]  }
   0x5   :  { %s2_s26 = smov 3  ;;  %s49_s29 = smov 3 }
   0x6   :  { %16 = vrot.lane.b32.xlu0 %v70_v2, %s86_s22  ;;  %v3_v6 = vld [vmem:[%s131_s0] ss:$8 sm:%s2_s26]   ;;  %s88_s3 = smov 48   ;;  %s89_s4 = smov 32  }
   0x7   :  { %30 = vrot.lane.b32.xlu1 %v72_v3, %s87_s23  ;;  %5 = vst.msk [vmem:[#allocation0] ss:$8 sm:$0x3] %vm4_vm0, %v3_v6   ;;  %v75_v7 = vld [vmem:[%s131_s0 + $0x1] ss:$8 sm:%s49_s29]   ;;  %s90_s0 = smov 16  }
   0xa   :  { %37 = vrot.lane.b32.xlu0 %v73_v4, %s88_s3 }
   0xb   :  { %44 = vrot.lane.b32.xlu1 %v74_v5, %s89_s4 }
   0xe   :  { %51 = vrot.lane.b32.xlu0 %v75_v7, %s90_s0 }
  0x74   :  { %v10_v8 = vpop.permute.xlu0 %9  }
  0x75   :  { %12 = vst.msk [vmem:[#allocation0] ss:$8 sm:$0x3] %vm11_vm1, %v10_v8   ;;  %v24_v9 = vpop.permute.xlu1 %23  }
  0x78   :  { %v17_v10 = vpop.permute.xlu0 %16  }
  0x79   :  { %19 = vst.msk [vmem:[#allocation0] ss:$8 sm:$0x3] %vm18_vm2, %v17_v10   ;;  %v31_v11 = vpop.permute.xlu1 %30  }
  0x7a   :  { %26 = vst.msk [vmem:[#allocation0] ss:$8 sm:$0x3] %vm25_vm3, %v24_v9  }
  0x7b   :  { %33 = vst.msk [vmem:[#allocation0] ss:$8 sm:$0x3] %vm32_vm4, %v31_v11  }
  0x7c   :  { %v38_v12 = vpop.permute.xlu0 %37  }
  0x7d   :  { %40 = vst.msk [vmem:[#allocation0] ss:$8 sm:$0x3] %vm39_vm5, %v38_v12   ;;  %v45_v13 = vpop.permute.xlu1 %44  }
  0x7e   :  { %47 = vst.msk [vmem:[#allocation0] ss:$8 sm:$0x3] %vm46_vm6, %v45_v13  }
  0x80   :  { %v52_v14 = vpop.permute.xlu0 %51  }
  0x81   :  { %54 = vst.msk [vmem:[#allocation0] ss:$8 sm:$0x3] %vm53_vm7, %v52_v14  }
  0x88   :  { %v59_v15 = vld [vmem:[#allocation0] sm:$0x1]  ;;  %v64_v16 = vld [vmem:[#allocation0 + $0x8] sm:$0x1] }
  0x89   :  { %62 = vst [vmem:[%s132_s1] sm:$0x1] %v59_v15  ;;  %76 = vst [vmem:[%s132_s1 + $0x1] sm:$0x1] %v64_v16 }

// kernel: mffkan_forward.1
= control target key start
LH: loop header
LB: loop body
LE: loop exit
PB: predicated region body
PF: predicated region fallthrough
CT: control target
= control target key end

     0   :  { %s1986_s15 = smov 0   ;;  %s2358_s0 = inlined_call_operand.vmem [shape: bf16[64,72], index: 0, kind: input, shape index: {}]   ;;  %s2359_s1 = inlined_call_operand.vmem [shape: bf16[3,72,256], index: 1, kind: input, shape index: {}]   ;;  %s2360_s2 = inlined_call_operand.vmem [shape: f32[1,256], index: 2, kind: input, shape index: {}]   ;;  %s2361_s3 = inlined_call_operand.vmem [shape: f32[256,16], index: 3, kind: input, shape index: {}]   ;;  %s2362_s4 = inlined_call_operand.vmem [shape: bf16[16,512], index: 4, kind: input, shape index: {}]   ;;  %s2363_s5 = inlined_call_operand.vmem [shape: f32[1,512], index: 5, kind: input, shape index: {}]   ;;  %s2364_s6 = inlined_call_operand.vmem [shape: f32[1,512], index: 6, kind: input, shape index: {}]   ;;  %s2365_s7 = inlined_call_operand.vmem [shape: f32[1,512], index: 7, kind: input, shape index: {}]   ;;  %s2366_s8 = inlined_call_operand.vmem [shape: bf16[512,32], index: 8, kind: input, shape index: {}]   ;;  %s2367_s9 = inlined_call_operand.vmem [shape: f32[1,32], index: 9, kind: input, shape index: {}]   ;;  %s2368_s10 = inlined_call_operand.vmem [shape: f32[1,32], index: 10, kind: input, shape index: {}]   ;;  %s2369_s11 = inlined_call_operand.vmem [shape: f32[1,32], index: 11, kind: input, shape index: {}]   ;;  %s2370_s12 = inlined_call_operand.vmem [shape: bf16[32,1], index: 12, kind: input, shape index: {}]   ;;  %s2371_s13 = inlined_call_operand.<no memory space> [shape: f32[1,1], index: 13, kind: input, shape index: {}]   ;;  %s2372_s14 = inlined_call_operand.vmem [shape: f32[2,1,1], index: 14, kind: output, shape index: {}]  }
   0x1   :  { %v19_v0 = vstv %s2371_s13 }
   0x2   :  { %20 = vst [vmem:[#allocation2] sm:$0x1] %v19_v0 }
   0x3 LB: > { %s1992_s16 = sadd.s32 4294967295, %s1903_s15   ;;  %p1608_p0 = scmp.ge.s32.totalorder %s1903_s15, 1  ;;  %s1903_s15 = sphi %s1986_s15, %s26_s15  }
   0x4   : > { %p415_p1 = scmp.lt.s32.totalorder %s1903_s15, 3 }
   0x6   : > { %p416_p2 = pnand %p1608_p0, %p415_p1 }
   0x7   : > { %s1609_s20 = sshll.u32 (!%p416_p2), %s1992_s16, 2  ;;  %p465_p4 = scmp.lt.s32.totalorder (!%p416_p2), %s1992_s16, 1 }
   0x8   : > { %419 = sbr.rel (%p416_p2) target bundleno = 1093 (0x445), region = 76  ;;  %p460_p3 = scmp.lt.s32.totalorder (!%p416_p2), %s1609_s20, 7 }
   0xd   : > { %v1619_v1 = vld [vmem:[%s2359_s1 + $0x88] sm:$0xff]  ;;  %vm561_vm0 = vcmask 1043456   ;;  %v479_v2 = vld [vmem:[%s2359_s1 + $0x40] sm:$0xff]  ;;  %v1905_v8 = vmov 0   ;;  %v1818_v9 = vld [vmem:[%s2359_s1 + $0x34] ss:$8 sps:$4 sm:$0xff]  }
   0xe   : > { %v1631_v3 = vcombine.high %v1619_v1, %v1619_v1  ;;  %v1643_v4 = vcombine.high %v479_v2, %v479_v2  ;;  %v1630_v5 = vcombine.low %v1619_v1, %v1619_v1  ;;  %v1642_v6 = vcombine.low %v479_v2, %v479_v2  ;;  %v1816_v7 = vld [vmem:[%s2359_s1 + $0x7c] ss:$8 sps:$4 sm:$0xff]   ;;  %600 = vmatprep.mubr.bf16.mxu0 %v1905_v8  ;;  %v1820_v12 = vld [vmem:[%s2359_s1 + $0x78] ss:$8 sps:$4 sm:$0xff]   ;;  %s2374_s20 = smov (!%p460_p3, %s1609_s20), 7  ;;  %v1654_v28 = vld [vmem:[%s2359_s1 + $0xd0] sm:$0xff] }
   0xf   : > { %696 = vmatprep.mubr.bf16.mxu1 %v1905_v8  ;;  %v1821_v13 = vld [vmem:[%s2359_s1 + $0x30] ss:$8 sps:$4 sm:$0xff]   ;;  %v1822_v14 = vld [vmem:[%s2359_s1 + $0x6c] ss:$8 sps:$4 sm:$0xff]   ;;  %s1610_s13 = sshll.u32 %s2374_s20, 2  ;;  %v1664_v36 = vcombine.low %v1654_v28, %v1654_v28  ;;  %v1665_v37 = vcombine.high %v1654_v28, %v1654_v28  ;;  %vm557_vm2 = vcmask 588800  }
  0x10   : > { %1632 = vmatprep.subr.msk.bf16.mxu0 %vm561_vm0, %v1631_v3  ;;  %1644 = vmatprep.subr.msk.bf16.mxu1 %vm561_vm0, %v1643_v4  ;;  %v563_v10 = vsel %vm561_vm0, %v1630_v5, 0  ;;  %v659_v11 = vsel %vm561_vm0, %v1642_v6, 0  ;;  %v1824_v15 = vld [vmem:[%s2359_s1 + $0x24] ss:$8 sps:$4 sm:$0xff]   ;;  %v1826_v16 = vld [vmem:[%s2359_s1 + $0x68] ss:$8 sps:$4 sm:$0xff]   ;;  %s2039_s28 = scalar_lea.vmem %s2358_s0, %s1610_s13 }
  0x11   : > { %575 = vmatpush1.bf16.msra.mxu0 %v563_v10  ;;  %671 = vmatpush1.bf16.msra.mxu1 %v659_v11  ;;  %v1827_v17 = vld [vmem:[%s2359_s1 + $0x20] ss:$8 sps:$4 sm:$0xff]   ;;  %v1828_v18 = vld [vmem:[%s2359_s1 + $0x5c] ss:$8 sps:$4 sm:$0xff]   ;;  %v1833_v21 = vld [vmem:[%s2359_s1 + $0x10] ss:$8 sps:$4 sm:$0xff]  }
  0x12   : > { %576 = vmatprep.subr.bf16.mxu0 %v1816_v7  ;;  %672 = vmatprep.subr.bf16.mxu1 %v1818_v9  ;;  %v1830_v19 = vld [vmem:[%s2359_s1 + $0x14] ss:$8 sps:$4 sm:$0xff]   ;;  %v1832_v20 = vld [vmem:[%s2359_s1 + $0x58] ss:$8 sps:$4 sm:$0xff]   ;;  %v1836_v23 = vld [vmem:[%s2359_s1 + $0x4] ss:$8 sps:$4 sm:$0xff]  }
  0x13   : > { %v1834_v22 = vld [vmem:[%s2359_s1 + $0x4c] ss:$8 sps:$4 sm:$0xff]   ;;  %v469_v24 = vld [vmem:[%s2039_s28] sm:$0xf]  ;;  %v470_v25 = vld [vmem:[%s2039_s28 + $0x4] sm:$0xf] }
  0x14   : > { %v1620_v26 = vcombine.low %v469_v24, %v470_v25  ;;  %v1841_v27 = vld [vmem:[%s2039_s28 + $0x8] ss:$0 sps:$4 sm:$0x11]   ;;  %vm499_vm1 = vsmask.f32 7424  ;;  %v774_v43 = vsel %vm561_vm0, %v1664_v36, 0 }
  0x15   : > { %577 = vmatpush1.bf16.msra.mxu0 %v1820_v12  ;;  %673 = vmatpush1.bf16.msra.mxu1 %v1821_v13  ;;  %v508_v31 = vshll.u32 %v1841_v27, 16  ;;  %v1838_v32 = vld [vmem:[%s2359_s1 + $0x48] ss:$8 sps:$4 sm:$0xff]   ;;  %v707_v39 = vld [vmem:[%s2039_s28] sm:$0xe]  ;;  %v723_v45 = vrot.slane %v1841_v27, 1 }
  0x16   : > { %578 = vmatprep.subr.bf16.mxu0 %v1822_v14  ;;  %674 = vmatprep.subr.bf16.mxu1 %v1824_v15  ;;  %v501_v29 = vshrl.u32 %v1620_v26, 16  ;;  %v503_v30 = vshll.u32 %v1620_v26, 16  ;;  %v1839_v33 = vld [vmem:[%s2359_s1] ss:$8 sps:$4 sm:$0xff]   ;;  %v1846_v40 = vld [vmem:[%s2359_s1 + $0xc4] ss:$8 sps:$4 sm:$0xff]   ;;  %v1655_v41 = vcombine.low %v707_v39, %v470_v25 }
  0x17   : > { %v510_v35 = vrot.slane %v508_v31, 1  ;;  %v1844_v46 = vld [vmem:[%s2359_s1 + $0xc0] ss:$8 sps:$4 sm:$0xff]   ;;  %v1849_v47 = vld [vmem:[%s2359_s1 + $0xb4] ss:$8 sps:$4 sm:$0xff]   ;;  %vm721_vm3 = vcmask 1046528  }
  0x18   : > { %v505_v34 = vrot.slane %v503_v30, 1  ;;  %v722_v44 = vrot.slane %v1655_v41, 1  ;;  %v1847_v48 = vld [vmem:[%s2359_s1 + $0xb0] ss:$8 sps:$4 sm:$0xff]   ;;  %v1852_v49 = vld [vmem:[%s2359_s1 + $0xa4] ss:$8 sps:$4 sm:$0xff]  }
  0x19   : > { %579 = vmatpush1.bf16.msra.mxu0 %v1826_v16  ;;  %675 = vmatpush1.bf16.msra.mxu1 %v1827_v17  ;;  %v1850_v50 = vld [vmem:[%s2359_s1 + $0xa0] ss:$8 sps:$4 sm:$0xff]   ;;  %v1855_v51 = vld [vmem:[%s2359_s1 + $0x94] ss:$8 sps:$4 sm:$0xff]   ;;  %v1853_v52 = vld [vmem:[%s2359_s1 + $0x90] ss:$8 sps:$4 sm:$0xff]  }
  0x1a   : > { %580 = vmatprep.subr.bf16.mxu0 %v1828_v18  ;;  %676 = vmatprep.subr.bf16.mxu1 %v1830_v19  ;;  %v506_v38 = vor.u32 %v505_v34, %v501_v29  ;;  %v724_v53 = vsel %vm721_vm3, %v722_v44, %v723_v45  ;;  %v891_v54 = vld [vmem:[%s2361_s3 + $0xf8] sm:$0xff]  ;;  %v890_v56 = vld [vmem:[%s2361_s3 + $0xf0] sm:$0xff]  ;;  %v889_v58 = vld [vmem:[%s2361_s3 + $0xe8] sm:$0xff]  ;;  %vm1009_vm4 = vcmask 130048   ;;  %vm1907_vm5 = vmmov 0   ;;  %s2376_s16 = smov (!%p465_p4, %s1992_s16), 1 }
  0x1b   : > { %v875_v55 = vld [vmem:[%s2361_s3 + $0x78] sm:$0xff]  ;;  %v874_v57 = vld [vmem:[%s2361_s3 + $0x70] sm:$0xff]  ;;  %v873_v59 = vld [vmem:[%s2361_s3 + $0x68] sm:$0xff]  ;;  %vm1511_vm6 = vcmask 261120   ;;  %s467_s22 = scalar_lea.vmem %s2372_s14, %s2376_s16  ;;  %vm1555_vm7 = vcmask 0  }
  0x1c   : > { %v511_v42 = vsel %vm499_vm1, %v506_v38, %v510_v35  ;;  %v888_v60 = vld [vmem:[%s2361_s3 + $0xe0] sm:$0xff]  ;;  %v887_v62 = vld [vmem:[%s2361_s3 + $0xd8] sm:$0xff]  ;;  %v886_v0 = vld [vmem:[%s2361_s3 + $0xd0] sm:$0xff] }
  0x1d   : > { %581 = vmatpush1.bf16.msra.mxu0 %v1832_v20  ;;  %677 = vmatpush1.bf16.msra.mxu1 %v1833_v21  ;;  %v872_v61 = vld [vmem:[%s2361_s3 + $0x60] sm:$0xff]  ;;  %v871_v63 = vld [vmem:[%s2361_s3 + $0x58] sm:$0xff]  ;;  %v870_v1 = vld [vmem:[%s2361_s3 + $0x50] sm:$0xff] }
  0x1e   : > { %582 = vmatprep.subr.bf16.mxu0 %v1834_v22  ;;  %678 = vmatprep.subr.bf16.mxu1 %v1836_v23  ;;  %v885_v2 = vld [vmem:[%s2361_s3 + $0xc8] sm:$0xff]  ;;  %v884_v4 = vld [vmem:[%s2361_s3 + $0xc0] sm:$0xff]  ;;  %v883_v6 = vld [vmem:[%s2361_s3 + $0xb8] sm:$0xff] }
  0x1f   : > { %v869_v3 = vld [vmem:[%s2361_s3 + $0x48] sm:$0xff]  ;;  %v868_v5 = vld [vmem:[%s2361_s3 + $0x40] sm:$0xff]  ;;  %v867_v7 = vld [vmem:[%s2361_s3 + $0x38] sm:$0xff] }
  0x20   : > { %v882_v9 = vld [vmem:[%s2361_s3 + $0xb0] sm:$0xff]  ;;  %v881_v11 = vld [vmem:[%s2361_s3 + $0xa8] sm:$0xff]  ;;  %v880_v13 = vld [vmem:[%s2361_s3 + $0xa0] sm:$0xff] }
  0x21   : > { %583 = vmatpush1.bf16.msra.mxu0 %v1838_v32  ;;  %679 = vmatpush1.bf16.msra.mxu1 %v1839_v33  ;;  %v866_v10 = vld [vmem:[%s2361_s3 + $0x30] sm:$0xff]  ;;  %v865_v12 = vld [vmem:[%s2361_s3 + $0x28] sm:$0xff]  ;;  %v864_v14 = vld [vmem:[%s2361_s3 + $0x20] sm:$0xff] }
  0x22   : > { %1666 = vmatprep.subr.msk.bf16.mxu0 %vm561_vm0, %v1665_v37  ;;  %1711 = vmatprep.subr.mxu1 %v891_v54  ;;  %v879_v15 = vld [vmem:[%s2361_s3 + $0x98] sm:$0xff]  ;;  %v878_v17 = vld [vmem:[%s2361_s3 + $0x90] sm:$0xff]  ;;  %v877_v19 = vld [vmem:[%s2361_s3 + $0x88] sm:$0xff] }
  0x23   : > { %v863_v16 = vld [vmem:[%s2361_s3 + $0x18] sm:$0xff]  ;;  %v862_v18 = vld [vmem:[%s2361_s3 + $0x10] sm:$0xff]  ;;  %v861_v20 = vld [vmem:[%s2361_s3 + $0x8] sm:$0xff] }
  0x24   : > { %1633 = vmatmul.mubr.msk.bf16.vlgmr.msra.gmra.mxu0 %vm557_vm2, %v511_v42  ;;  %1645 = vmatmul.mubr.msk.bf16.vlgmr.msra.gmra.mxu1 %vm557_vm2, %v1620_v26  ;;  %v876_v21 = vld [vmem:[%s2361_s3 + $0x80] sm:$0xff]  ;;  %v828_v26 = vlaneseq }
  0x25   : > { %786 = vmatpush1.bf16.msra.mxu0 %v774_v43  ;;  %811 = vmatprep.mubr.bf16.mxu0 %v1905_v8  ;;  %v860_v22 = vld [vmem:[%s2361_s3] sm:$0xff] }
  0x26   : > { %787 = vmatprep.subr.bf16.mxu0 %v1846_v40  ;;  %1712 = vmatpush3.msra.mxu1 %v875_v55  ;;  %v1857_v23 = vld [vmem:[%s2362_s4] ss:$16 sps:$4 sm:$0xff]   ;;  %v1859_v24 = vld [vmem:[%s2362_s4 + $0x4] ss:$16 sps:$4 sm:$0xff]   ;;  %v2202_v29 = vshrl.u32 %v828_v26, 7 }
  0x27   : > { %1713 = vmatprep.subr.mxu1 %v890_v56  ;;  %v826_v35 = vld [vmem:[%s2360_s2] sm:$0x3] }
  0x28   : > { %1714 = vmatpush3.msra.mxu1 %v874_v57  ;;  %v2205_v32 = vsub.s32 0, %v2202_v29  ;;  %v2211_v37 = vsub.s32 1, %v2202_v29 }
  0x29   : > { %788 = vmatpush1.bf16.msra.mxu0 %v1844_v46  ;;  %1715 = vmatprep.subr.mxu1 %v889_v58 }
  0x2a   : > { %789 = vmatprep.subr.bf16.mxu0 %v1849_v47  ;;  %1716 = vmatpush3.msra.mxu1 %v873_v59  ;;  %v831_v41 = vrot.slane %v826_v35, %v2205_v32  ;;  %v835_v46 = vrot.slane %v826_v35, %v2211_v37  ;;  %v1880_v35 = vld [vmem:[%s2366_s8 + $0xe0] sm:$0xff]  }
  0x2b   : > { %1717 = vmatprep.subr.mxu1 %v888_v60 }
  0x2c   : > { %1718 = vmatpush3.msra.mxu1 %v872_v61 }
  0x2d   : > { %790 = vmatpush1.bf16.msra.mxu0 %v1847_v48  ;;  %1719 = vmatprep.subr.mxu1 %v887_v62 }
  0x2e   : > { %791 = vmatprep.subr.bf16.mxu0 %v1852_v49  ;;  %1720 = vmatpush3.msra.mxu1 %v871_v63 }
  0x2f   : > { %1721 = vmatprep.subr.mxu1 %v886_v0 }
  0x30   : > { %1722 = vmatpush3.msra.mxu1 %v870_v1 }
  0x31   : > { %792 = vmatpush1.bf16.msra.mxu0 %v1850_v50  ;;  %1723 = vmatprep.subr.mxu1 %v885_v2 }
  0x32   : > { %793 = vmatprep.subr.bf16.mxu0 %v1855_v51  ;;  %1724 = vmatpush3.msra.mxu1 %v869_v3 }
  0x33   : > { %1725 = vmatprep.subr.mxu1 %v884_v4 }
  0x34   : > { %1726 = vmatpush3.msra.mxu1 %v868_v5 }
  0x35   : > { %794 = vmatpush1.bf16.msra.mxu0 %v1853_v52  ;;  %1727 = vmatprep.subr.mxu1 %v883_v6 }
  0x36   : > { %1728 = vmatpush3.msra.mxu1 %v867_v7  ;;  %1027 = vmatprep.subr.bf16.mxu0 %v1859_v24 }
  0x37   : > { %1729 = vmatprep.subr.mxu1 %v882_v9 }
  0x38   : > { %1667 = vmatmul.mubr.msk.bf16.vlgmr.msra.gmra.mxu0 %vm557_vm2, %v724_v53  ;;  %1730 = vmatpush3.msra.mxu1 %v866_v10 }
  0x39   : > { %1045 = vmatprep.mubr.bf16.mxu0 %v1905_v8  ;;  %1731 = vmatprep.subr.mxu1 %v881_v11  ;;  %v1862_v11 = vld [vmem:[%s2362_s4 + $0xc] ss:$16 sps:$4 sm:$0xff]  }
  0x3a   : > { %1732 = vmatpush3.msra.mxu1 %v865_v12  ;;  %1028 = vmatpush1.bf16.msra.mxu0 %v1857_v23  ;;  %v1863_v12 = vld [vmem:[%s2366_s8 + $0x78] sm:$0xff]  }
  0x3b   : > { %1733 = vmatprep.subr.mxu1 %v880_v13  ;;  %1068 = vmatprep.subr.bf16.mxu0 %v1862_v11  ;;  %v1864_v13 = vld [vmem:[%s2366_s8 + $0x38] sm:$0xff]  }
  0x3c   : > { %1734 = vmatpush3.msra.mxu1 %v864_v14  ;;  %v1865_v14 = vld [vmem:[%s2366_s8 + $0x70] sm:$0xff]  }
  0x3d   : > { %1735 = vmatprep.subr.mxu1 %v879_v15  ;;  %v1866_v15 = vld [vmem:[%s2366_s8 + $0x30] sm:$0xff]  }
  0x3e   : > { %1736 = vmatpush3.msra.mxu1 %v863_v16  ;;  %v1867_v16 = vld [vmem:[%s2366_s8 + $0x68] sm:$0xff]  }
  0x3f   : > { %1737 = vmatprep.subr.mxu1 %v878_v17  ;;  %v1869_v17 = vld [vmem:[%s2366_s8 + $0x28] sm:$0xff]  }
  0x40   : > { %1738 = vmatpush3.msra.mxu1 %v862_v18  ;;  %v1871_v18 = vld [vmem:[%s2366_s8 + $0x60] sm:$0xff]  }
  0x41   : > { %1739 = vmatprep.subr.mxu1 %v877_v19  ;;  %v1873_v19 = vld [vmem:[%s2366_s8 + $0x20] sm:$0xff]  }
  0x42   : > { %1740 = vmatpush3.msra.mxu1 %v861_v20  ;;  %v1875_v20 = vld [vmem:[%s2366_s8 + $0x58] sm:$0xff]  }
  0x43   : > { %1741 = vmatprep.subr.mxu1 %v876_v21  ;;  %v1877_v21 = vld [vmem:[%s2366_s8 + $0x18] sm:$0xff]  }
  0x44   : > { %1742 = vmatpush3.msra.mxu1 %v860_v22 }
  0x45   : > { %1746 = vmatprep.subr.bf16.mxu1 %v1863_v12 }
  0xe4   : > { %v602_v25 = vpop.f32.mrf.mxu0  ;;  %v698_v27 = vpop.f32.mrf.mxu1 }
  0xe5   : > { %v699_v36 = vadd.f32 %v698_v27, %v602_v25  ;;  %v1860_v25 = vld [vmem:[%s2362_s4 + $0x8] ss:$16 sps:$4 sm:$0xff]  }
  0xe6   : > { %v604_v28 = vpop.f32.mrf.mxu0  ;;  %v700_v30 = vpop.f32.mrf.mxu1  ;;  %v1868_v27 = vld [vmem:[%s2366_s8 + $0xf8] sm:$0xff]  }
  0xe7   : > { %v701_v39 = vadd.f32 %v700_v30, %v604_v28  ;;  %v1870_v28 = vld [vmem:[%s2366_s8 + $0xb8] sm:$0xff]   ;;  %v1872_v30 = vld [vmem:[%s2366_s8 + $0xf0] sm:$0xff]  }
  0xe8   : > { %v606_v31 = vpop.f32.mrf.mxu0  ;;  %v702_v33 = vpop.f32.mrf.mxu1 }
  0xe9   : > { %v703_v44 = vadd.f32 %v702_v33, %v606_v31  ;;  %v1874_v31 = vld [vmem:[%s2366_s8 + $0xb0] sm:$0xff]   ;;  %v1878_v33 = vld [vmem:[%s2366_s8 + $0xa8] sm:$0xff]  }
  0xea   : > { %v608_v34 = vpop.f32.mrf.mxu0  ;;  %v704_v42 = vpop.f32.mrf.mxu1 }
  0xeb   : > { %v705_v48 = vadd.f32 %v704_v42, %v608_v34  ;;  %v1879_v34 = vld [vmem:[%s2366_s8 + $0x50] sm:$0xff]   ;;  %v1886_v42 = vld [vmem:[%s2366_s8 + $0x98] sm:$0xff]  }
  0xf8   : > { %v813_v38 = vpop.f32.mrf.mxu0 }
  0xf9   : > { %v822_v40 = vadd.f32 %v813_v38, %v699_v36  ;;  %v1881_v36 = vld [vmem:[%s2366_s8 + $0x10] sm:$0xff]   ;;  %v1882_v38 = vld [vmem:[%s2366_s8 + $0xa0] sm:$0xff]  }
  0xfa   : > { %v815_v43 = vpop.f32.mrf.mxu0 }
  0xfb   : > { %v823_v45 = vadd.f32 %v815_v43, %v701_v39  ;;  %v838_v49 = vadd.f32 %v831_v41, %v822_v40  ;;  %v1883_v39 = vld [vmem:[%s2366_s8 + $0x48] sm:$0xff]   ;;  %v1884_v40 = vld [vmem:[%s2366_s8 + $0xd8] sm:$0xff]   ;;  %v1887_v43 = vld [vmem:[%s2366_s8 + $0x40] sm:$0xff]  }
  0xfc   : > { %v817_v47 = vpop.f32.mrf.mxu0 }
  0xfd   : > { %v824_v50 = vadd.f32 %v817_v47, %v703_v44  ;;  %v839_v52 = vadd.f32 %v835_v46, %v823_v45  ;;  %v842_v55 = vmax.f32 %v838_v49, 0.0  ;;  %v1888_v44 = vld [vmem:[%s2366_s8 + $0xd0] sm:$0xff]   ;;  %v1889_v45 = vld [vmem:[%s2366_s8] sm:$0xff]   ;;  %v1891_v47 = vld [vmem:[%s2366_s8 + $0xc8] sm:$0xff]  }
  0xfe   : > { %v819_v51 = vpop.f32.mrf.mxu0  ;;  %v1893_v49 = vld [vmem:[%s2366_s8 + $0xc0] sm:$0xff]  }
  0xff   : > { %v840_v53 = vadd.f32 %v831_v41, %v824_v50  ;;  %v825_v54 = vadd.f32 %v819_v51, %v705_v48  ;;  %v843_v58 = vmax.f32 %v839_v52, 0.0  ;;  %v1885_v41 = vld [vmem:[%s2366_s8 + $0x8] sm:$0xff]   ;;  %v1894_v50 = vld [vmem:[%s2366_s8 + $0x80] sm:$0xff]  }
 0x100   : > { %v1892_v48 = vld [vmem:[%s2366_s8 + $0x88] sm:$0xff]   ;;  %v967_v51 = vld [vmem:[%s2363_s5] sm:$0xf] }
 0x101   : > { %v844_v56 = vmax.f32 %v840_v53, 0.0  ;;  %v841_v57 = vadd.f32 %v835_v46, %v825_v54  ;;  %v1890_v46 = vld [vmem:[%s2366_s8 + $0x90] sm:$0xff]   ;;  %v1095_v52 = vld [vmem:[%s2364_s6] sm:$0xf]  ;;  %v992_v53 = vrot.slane %v967_v51, %v2205_v32 }
 0x102   : > { %v1100_v54 = vrot.slane %v1095_v52, %v2205_v32 }
 0x103   : > { %v846_v59 = vadd.f32 %v844_v56, %v842_v55  ;;  %v845_v60 = vmax.f32 %v841_v57, 0.0  ;;  %v1121_v55 = vld [vmem:[%s2365_s7] sm:$0xf]  ;;  %v996_v56 = vrot.slane %v967_v51, %v2211_v37 }
 0x105   : > { %v847_v61 = vrot.slane %v846_v59, 4  ;;  %v853_v62 = vadd.f32 %v845_v60, %v843_v58  ;;  %v999_v60 = vsub.s32 2, %v2202_v29 }
 0x107   : > { %v848_v63 = vadd.f32 %v847_v61, %v846_v59  ;;  %v854_v0 = vrot.slane %v853_v62, 4  ;;  %v1104_v59 = vrot.slane %v1095_v52, %v2211_v37  ;;  %v1126_v61 = vrot.slane %v1121_v55, %v2205_v32 }
 0x109   : > { %v849_v1 = vrot.slane %v848_v63, 2  ;;  %v855_v2 = vadd.f32 %v854_v0, %v853_v62 }
 0x10b   : > { %v850_v3 = vadd.f32 %v849_v1, %v848_v63  ;;  %v856_v4 = vrot.slane %v855_v2, 2  ;;  %v1003_v1 = vsub.s32 3, %v2202_v29 }
 0x10d   : > { %v857_v5 = vadd.f32 %v856_v4, %v855_v2  ;;  %v851_v6 = vrot.slane %v850_v3, 1  ;;  %v1130_v2 = vrot.slane %v1121_v55, %v2211_v37  ;;  %v1138_v29 = vrot.slane %v1121_v55, %v1003_v1 }
 0x10f   : > { %v858_v7 = vrot.slane %v857_v5, 1  ;;  %v852_v10 = vadd.f32 %v851_v6, %v850_v3 }
 0x111   : > { %v859_v9 = vadd.f32 %v858_v7, %v857_v5  ;;  %v1000_v5 = vrot.slane %v967_v51, %v999_v60 }
 0x113   : > { %956 = vmatprep.mubr.f32.mxu1 %v859_v9  ;;  %v1108_v9 = vrot.slane %v1095_v52, %v999_v60 }
 0x114   : > { %957 = vmatmul.mubr.f32.vlgmr.msra.gmra.mxu1 %v852_v10  ;;  %v1004_v10 = vrot.slane %v967_v51, %v1003_v1 }
 0x115   : > { %1747 = vmatpush3.bf16.msra.mxu1 %v1864_v13 }
 0x116   : > { %1748 = vmatprep.subr.bf16.mxu1 %v1865_v14  ;;  %v1112_v14 = vrot.slane %v1095_v52, %v1003_v1 }
 0x119   : > { %1749 = vmatpush3.bf16.msra.mxu1 %v1866_v15 }
 0x11a   : > { %1750 = vmatprep.subr.bf16.mxu1 %v1867_v16  ;;  %v1134_v16 = vrot.slane %v1121_v55, %v999_v60 }
 0x11d   : > { %1751 = vmatpush3.bf16.msra.mxu1 %v1869_v17 }
 0x11e   : > { %1752 = vmatprep.subr.bf16.mxu1 %v1871_v18 }
 0x121   : > { %1753 = vmatpush3.bf16.msra.mxu1 %v1873_v19 }
 0x122   : > { %1754 = vmatprep.subr.bf16.mxu1 %v1875_v20 }
 0x125   : > { %1755 = vmatpush3.bf16.msra.mxu1 %v1877_v21 }
 0x126   : > { %1756 = vmatprep.subr.bf16.mxu1 %v1879_v34 }
 0x129   : > { %1757 = vmatpush3.bf16.msra.mxu1 %v1881_v36 }
 0x12a   : > { %1758 = vmatprep.subr.bf16.mxu1 %v1883_v39 }
 0x12d   : > { %1759 = vmatpush3.bf16.msra.mxu1 %v1885_v41  ;;  %v1488_v41 = vld [vmem:[%s2368_s10] sm:$0x1] }
 0x12e   : > { %1760 = vmatprep.subr.bf16.mxu1 %v1887_v43 }
 0x131   : > { %1761 = vmatpush3.bf16.msra.mxu1 %v1889_v45 }
 0x1d4   : > { %v1743_v22 = vpop.f32.mrf.mxu1 }
 0x1d6   : > { %v1744_v23 = vpop.f32.mrf.mxu1 }
 0x1d7   : > { %v1745_v24 = vadd.f32 %v1744_v23, %v1743_v22 }
 0x1d9   : > { %v962_v26 = vpack.c.bf16 %v1745_v24, %v1745_v24 }
 0x1db   : > { %1672 = vmatmul.mubr.msk.bf16.vlgmr.msra.gmra.mxu0 %vm1009_vm4, %v962_v26 }
 0x1dc   : > { %1069 = vmatpush1.bf16.msra.mxu0 %v1860_v25  ;;  %1086 = vmatprep.mubr.bf16.mxu0 %v1905_v8  ;;  %v1876_v8 = vld [vmem:[%s2366_s8 + $0xe8] sm:$0xff]  }
 0x1dd   : > { %1768 = vmatprep.subr.bf16.mxu0 %v1868_v27  ;;  %v1906_v27 = vmov 0.0  }
 0x1de   : > { %1793 = vmatprep.subr.bf16.mxu1 %v1906_v27 }
 0x1e3   : > { %1673 = vmatmul.mubr.msk.bf16.vlgmr.msra.gmra.mxu0 %vm1009_vm4, %v962_v26  ;;  %v1895_v26 = vld [vmem:[%s2370_s12 + $0x8] sm:$0xff]  }
 0x1e4   : > { %1769 = vmatpush3.bf16.msra.mxu0 %v1870_v28  ;;  %v1896_v28 = vld [vmem:[%s2370_s12] sm:$0xff]  }
 0x1e5   : > { %1770 = vmatprep.subr.bf16.mxu0 %v1872_v30 }
 0x1e8   : > { %1771 = vmatpush3.bf16.msra.mxu0 %v1874_v31 }
 0x1e9   : > { %1772 = vmatprep.subr.bf16.mxu0 %v1876_v8 }
 0x1ec   : > { %1773 = vmatpush3.bf16.msra.mxu0 %v1878_v33 }
 0x1ed   : > { %1774 = vmatprep.subr.bf16.mxu0 %v1880_v35  ;;  %v1215_v35 = vld [vmem:[%s2367_s9] sm:$0x1] }
 0x1f0   : > { %1775 = vmatpush3.bf16.msra.mxu0 %v1882_v38 }
 0x1f1   : > { %1776 = vmatprep.subr.bf16.mxu0 %v1884_v40 }
 0x1f4   : > { %1777 = vmatpush3.bf16.msra.mxu0 %v1886_v42 }
 0x1f5   : > { %1778 = vmatprep.subr.bf16.mxu0 %v1888_v44  ;;  %v1490_v44 = vld [vmem:[%s2369_s11] sm:$0x1] }
 0x1f8   : > { %1779 = vmatpush3.bf16.msra.mxu0 %v1890_v46 }
 0x1f9   : > { %1780 = vmatprep.subr.bf16.mxu0 %v1891_v47 }
 0x1fc   : > { %1781 = vmatpush3.bf16.msra.mxu0 %v1892_v48 }
 0x1fd   : > { %1782 = vmatprep.subr.bf16.mxu0 %v1893_v49 }
 0x200   : > { %1783 = vmatpush3.bf16.msra.mxu0 %v1894_v50  ;;  %v1498_v50 = vld [vmem:[#allocation2] sm:$0x1] }
 0x29b   : > { %v1047_v57 = vpop.f32.mrf.mxu0 }
 0x29c   : > { %v1048_v58 = vadd.f32 %v1047_v57, %v992_v53 }
 0x29d   : > { %v1049_v62 = vpop.f32.mrf.mxu0 }
 0x29e   : > { %v1117_v63 = vmul.f32 %v1100_v54, %v1048_v58  ;;  %v1050_v0 = vadd.f32 %v1049_v62, %v996_v56 }
 0x29f   : > { %v1051_v3 = vpop.f32.mrf.mxu0 }
 0x2a0   : > { %v1118_v4 = vmul.f32 %v1104_v59, %v1050_v0  ;;  %v1143_v6 = vadd.f32 %v1126_v61, %v1117_v63 }
 0x2a1   : > { %v1052_v7 = vpop.f32.mrf.mxu0 }
 0x2a2   : > { %v1144_v11 = vadd.f32 %v1130_v2, %v1118_v4  ;;  %v1147_v32 = vpack.c.bf16 %v1143_v6, %v1143_v6 }
 0x2a3   : > { %v1088_v12 = vpop.f32.mrf.mxu0 }
 0x2a4   : > { %v1089_v13 = vadd.f32 %v1088_v12, %v1000_v5  ;;  %v1148_v15 = vpack.c.bf16 %v1144_v11, %v1144_v11 }
 0x2a5   : > { %v1090_v17 = vpop.f32.mrf.mxu0 }
 0x2a6   : > { %v1119_v18 = vmul.f32 %v1108_v9, %v1089_v13  ;;  %v1091_v19 = vadd.f32 %v1090_v17, %v1004_v10  ;;  %1440 = vmatprep.mubr.bf16.mxu1 %v1148_v15 }
 0x2a7   : > { %v1092_v37 = vpop.f32.mrf.mxu0  ;;  %1441 = vmatmul.mubr.bf16.vlgmr.msra.gmra.mxu1 %v1147_v32 }
 0x2a8   : > { %v1120_v20 = vmul.f32 %v1112_v14, %v1091_v19  ;;  %v1145_v21 = vadd.f32 %v1134_v16, %v1119_v18  ;;  %1794 = vmatpush3.bf16.msra.mxu1 %v1895_v26  ;;  %1797 = vmatprep.mubr.msk.bf16.mxu1 %vm1907_vm5, %v1906_v27 }
 0x2a9   : > { %v1093_v22 = vpop.f32.mrf.mxu0  ;;  %1795 = vmatprep.subr.bf16.mxu1 %v1906_v27 }
 0x2aa   : > { %v1146_v23 = vadd.f32 %v1138_v29, %v1120_v20  ;;  %v1149_v25 = vpack.c.bf16 %v1145_v21, %v1145_v21 }
 0x2ac   : > { %v1150_v24 = vpack.c.bf16 %v1146_v23, %v1146_v23  ;;  %1796 = vmatpush3.bf16.msra.mxu1 %v1896_v28 }
 0x2ae   : > { %1480 = vmatprep.mubr.bf16.mxu0 %v1150_v24 }
 0x2af   : > { %1481 = vmatmul.mubr.bf16.vlgmr.msra.gmra.mxu0 %v1149_v25 }
 0x367   : > { %v1762_v30 = vpop.f32.mrf.mxu1 }
 0x369   : > { %v1763_v31 = vpop.f32.mrf.mxu1 }
 0x36a   : > { %v1764_v34 = vadd.f32 %v1763_v31, %v1762_v30 }
 0x36b   : > { %v1765_v8 = vpop.f32.mrf.mxu1 }
 0x36c   : > { %v1443_v39 = vadd.f32 %v1764_v34, %v1215_v35 }
 0x36d   : > { %v1766_v33 = vpop.f32.mrf.mxu1 }
 0x36f   : > { %v1784_v36 = vpop.f32.mrf.mxu0 }
 0x371   : > { %v1785_v38 = vpop.f32.mrf.mxu0 }
 0x372   : > { %v1786_v40 = vadd.f32 %v1785_v38, %v1784_v36 }
 0x373   : > { %v1787_v42 = vpop.f32.mrf.mxu0 }
 0x374   : > { %v1483_v43 = vadd.f32 %v1786_v40, %v1443_v39 }
 0x375   : > { %v1788_v45 = vpop.f32.mrf.mxu0 }
 0x376   : > { %v1489_v46 = vmul.f32 %v1488_v41, %v1483_v43 }
 0x378   : > { %v1491_v47 = vadd.f32 %v1490_v44, %v1489_v46 }
 0x37a   : > { %v1492_v48 = vmax.f32 %v1491_v47, 0.0 }
 0x37c   : > { %v1493_v49 = vpack.c.bf16 %v1492_v48, %v1492_v48 }
 0x37e   : > { %1798 = vmatmul.mubr.msk.bf16.vlgmr.msra.gmra.mxu1 %vm1511_vm6, %v1493_v49 }
 0x43e   : > { %v1549_v51 = vpop.f32.mrf.mxu1 }
 0x43f   : > { %v1550_v52 = vadd.f32 %v1549_v51, %v1498_v50 }
 0x440   : > { %v1799_v53 = vpop.f32.mrf.mxu1 }
 0x441   : > { %1556 = vst.msk [vmem:[%s467_s22] sm:$0x1] %vm1555_vm7, %v1550_v52 }
 0x442   : > { %v1552_v54 = vpop.f32.mrf.mxu1 }
 0x444   : > { %v1800_v55 = vpop.f32.mrf.mxu1 }
 0x445 PF: > { %s26_s15 = sadd.s32 1, %s1903_s15  }
 0x446   : > { %p23_p5 = scmp.ge.s32.totalorder %s26_s15, 4  }
 0x448   :  { %25 = sbr.rel (!%p23_p5) target bundleno = 3 (0x3), region = 108 }

</bundles_post_ra>
